<compile_context>
chip_gen: v6e
topology: v6e:2x2x1
jax: 0.10.0
libtpu: 0.0.40
codegen_flags: <defaults>
</compile_context>

<pallas_src>
import jax
import jax.numpy as jnp
from jax.experimental import pallas as pl
from jax.experimental.pallas import tpu as pltpu


def _round_up(x: int, m: int) -> int:
    return (x + m - 1) // m * m


def _make_mha_kernel(head_num: int, head_dim: int, hh_pad: int):
    hh = head_num * head_dim
    scale = float(head_dim) ** -0.5

    def kernel(ssa_ref, wq_ref, wkv_ref, bkv_ref, mask_ref, out_ref):
        # ssa_ref : (1, 2, M, D) bf16   M = BB*A merged (batch-block, agent) rows;
        #                                [:,0] = s rows (queries), [:,1] = sa rows (K/V)
        # wq_ref  : (D, HHp)     bf16   pre-transposed, heads packed along lanes,
        #                                zero-padded to HHp = round_up(H*hd, 128)
        # wkv_ref : (D, 2*HHp)   bf16   [K | V] fused
        # bkv_ref : (1, 2*HHp)   f32    zeros for the K half, V bias for the V half
        # mask_ref: (M, M)       f32    additive mask: 0 for same-batch & not-self,
        #                                -1e9 elsewhere (cross-batch pairs and self)
        # out_ref : (1, M, HHp)  f32
        x_s = ssa_ref[0, 0, :, :]                                            # (M, D)
        x_sa = ssa_ref[0, 1, :, :]                                           # (M, D)

        # Fused projections: two wide MXU matmuls over all BB*A rows at once.
        q = jnp.dot(x_s, wq_ref[...], preferred_element_type=jnp.float32)    # (M, HHp)
        kv = jnp.dot(x_sa, wkv_ref[...], preferred_element_type=jnp.float32) # (M, 2HHp)
        kv = kv + bkv_ref[...]
        k = kv[:, :hh_pad]                                                   # (M, HHp)
        v_lin = kv[:, hh_pad:]
        v = jnp.where(v_lin >= 0.0, v_lin, 0.01 * v_lin)   # LeakyReLU(0.01)

        mask = mask_ref[...]                                                 # (M, M)

        outs = []
        for h in range(head_num):         # static unroll; each iter is real MXU work
            lo = h * head_dim
            hi = lo + head_dim
            qh = q[:, lo:hi]                                                 # (M, hd)
            kh = k[:, lo:hi]
            vh = v[:, lo:hi]
            # logits[r, c] = <q_r, k_c>; the block-diagonal mask keeps only
            # same-batch, non-self (r, c) pairs in the softmax.
            logits = jax.lax.dot_general(
                qh, kh, (((1,), (1,)), ((), ())),
                preferred_element_type=jnp.float32)                          # (M, M)
            sl = scale * logits + mask
            m = jnp.max(sl, axis=-1, keepdims=True)
            e = jnp.exp(sl - m)
            denom = jnp.sum(e, axis=-1, keepdims=True)
            p = e * pl.reciprocal(denom, approx=False)                       # (M, M)
            outs.append(jnp.dot(p, vh, preferred_element_type=jnp.float32))  # (M, hd)

        if hh_pad > hh:
            outs.append(jnp.zeros((q.shape[0], hh_pad - hh), jnp.float32))
        # Single lane-dense (HHp multiple of 128) unmasked store per grid step.
        out_ref[0] = jnp.concatenate(outs, axis=-1).astype(out_ref.dtype)    # (M, HHp)

    return kernel


def mha_pallas(ssa, w_q, w_kv, b_kv, mask_add, *, head_num, head_dim, hh_pad):
    """ssa: (NB, 2, M, D) bf16; w_q: (D, HHp) bf16; w_kv: (D, 2*HHp) bf16;
    b_kv: (1, 2*HHp) f32; mask_add: (M, M) f32. Returns (NB, M, HHp) f32."""
    nb, _, m, d = ssa.shape
    kernel = _make_mha_kernel(head_num, head_dim, hh_pad)
    return pl.pallas_call(
        kernel,
        out_shape=jax.ShapeDtypeStruct((nb, m, hh_pad), jnp.float32),
        grid=(nb,),
        in_specs=[
            pl.BlockSpec((1, 2, m, d), lambda b: (b, 0, 0, 0)),
            # Constant index_maps: weights / bias / mask are fetched once and stay
            # resident in VMEM across all grid steps. (For v7x with large D/HH,
            # add pipeline_mode=pl.Buffered(1) to single-buffer these residents.)
            pl.BlockSpec((d, hh_pad), lambda b: (0, 0)),
            pl.BlockSpec((d, 2 * hh_pad), lambda b: (0, 0)),
            pl.BlockSpec((1, 2 * hh_pad), lambda b: (0, 0)),
            pl.BlockSpec((m, m), lambda b: (0, 0)),
        ],
        out_specs=pl.BlockSpec((1, m, hh_pad), lambda b: (b, 0, 0)),
        compiler_params=pltpu.CompilerParams(dimension_semantics=("parallel",)),
    )(ssa, w_q, w_kv, b_kv, mask_add)


def multi_head_attention_forward(sa_inputs, s_inputs, wq, wk, wv, bv, *,
                                 batch_block=64):
    """Mirrors multi_head_attention.forward.

    sa_inputs / s_inputs: lists (len A) of (B, D) arrays.
    wq/wk/wv: (H, head_dim, D) PyTorch Linear weights; bv: (H, 1, head_dim).
    Returns (all_atten_values, reg_atten) with
      all_atten_values[agent][head] -> (B, head_dim).
    """
    A = len(s_inputs)
    H, hd, D = wq.shape
    hh = H * hd
    hh_pad = _round_up(hh, 128)
    B = s_inputs[0].shape[0]

    # --- batch blocking ------------------------------------------------------
    BB = max(8, min(_round_up(batch_block, 8), _round_up(B, 8)))
    B_pad = _round_up(B, BB)
    NB = B_pad // BB
    M = BB * A                          # merged (batch-block, agent) rows per step

    # --- activation packing: lists -> (NB, 2, M, D) bf16 (one DMA per step) ---
    def pack(inputs):
        x = jnp.stack(inputs, axis=1)                          # (B, A, D)
        x = jnp.pad(x, ((0, B_pad - B), (0, 0), (0, 0)))       # zero-pad batch
        return x.reshape(NB, M, D)                             # row = b_local*A + a
    s_rows = pack(s_inputs)
    sa_rows = pack(sa_inputs)
    ssa = jnp.stack([s_rows, sa_rows], axis=1).astype(jnp.bfloat16)   # (NB, 2, M, D)

    # --- weight packing (wrapper-side layout plumbing; kernel stays 2-D) ------
    def pack_w(w):   # (H, hd, D) PyTorch Linear layout -> (D, HHp), zero lane-pad
        wt = w.reshape(hh, D).T
        return jnp.pad(wt, ((0, 0), (0, hh_pad - hh)))
    w_q = pack_w(wq).astype(jnp.bfloat16)
    w_kv = jnp.concatenate([pack_w(wk), pack_w(wv)], axis=1).astype(jnp.bfloat16)
    b_v = jnp.pad(bv.reshape(1, hh), ((0, 0), (0, hh_pad - hh)))
    b_kv = jnp.concatenate([jnp.zeros((1, hh_pad), jnp.float32),
                            b_v.astype(jnp.float32)], axis=1)         # (1, 2*HHp)

    # --- block-diagonal additive mask over the merged rows --------------------
    # 0 where "same batch element AND different agent"; -1e9 otherwise (cross-batch
    # pairs and the self pair). A finite -1e9 underflows to exactly 0 after exp in
    # f32, matching PyTorch's explicit self-exclusion for A >= 2 and staying
    # NaN-free. NOTE: for A == 1 the allowed key set is empty — the PyTorch
    # reference would error there, while this kernel returns a (meaningless but
    # finite) value; and the exclusion assumes |scaled logits| << 1e9.
    row = jnp.arange(M)
    same_batch = (row[:, None] // A) == (row[None, :] // A)
    not_self = row[:, None] != row[None, :]
    mask_add = jnp.where(same_batch & not_self, 0.0, -1e9).astype(jnp.float32)

    out = mha_pallas(ssa, w_q, w_kv, b_kv, mask_add,
                     head_num=H, head_dim=hd, hh_pad=hh_pad)           # (NB, M, HHp)
    out = out.reshape(B_pad, A, hh_pad)[:B, :, :hh]   # strip batch + lane padding

    all_atten_values = [[out[:, a, h * hd:(h + 1) * hd] for h in range(H)]
                        for a in range(A)]
    # Faithful to the reference module: logits are appended to the *outer*
    # all_atten_logits list, so all_atten_logits[i] (i < num_agent) stays an empty
    # list and every regularizer term is exactly 0.
    reg_atten = [0.0 for _ in range(A)]
    return all_atten_values, reg_atten


def _reference_forward(sa_inputs, s_inputs, wq, wk, wv, bv):
    """Pure-JAX transliteration of the PyTorch loops (for verification)."""
    H, hd, _ = wq.shape
    A = len(sa_inputs)
    scale = hd ** (-0.5)
    hp = jax.lax.Precision.HIGHEST
    all_vals = [[] for _ in range(A)]
    for h in range(H):
        qs = [jnp.dot(x, wq[h].T, precision=hp) for x in s_inputs]
        ks = [jnp.dot(x, wk[h].T, precision=hp) for x in sa_inputs]
        vs = [jax.nn.leaky_relu(jnp.dot(x, wv[h].T, precision=hp) + bv[h, 0], 0.01)
              for x in sa_inputs]
        for a in range(A):
            kstack = jnp.stack([k_ for i, k_ in enumerate(ks) if i != a])  # (A-1,B,hd)
            vstack = jnp.stack([v_ for i, v_ in enumerate(vs) if i != a])
            logits = jnp.einsum('bd,cbd->bc', qs[a], kstack, precision=hp)
            p = jax.nn.softmax(scale * logits, axis=1)
            all_vals[a].append(jnp.einsum('bc,cbd->bd', p, vstack, precision=hp))
    return all_vals


if __name__ == "__main__":
    head_num, model_dim, num_agent, batch = 4, 32, 3, 2
    head_dim = model_dim // head_num

    key = jax.random.PRNGKey(0)
    ks = jax.random.split(key, 6)
    wq = 0.1 * jax.random.normal(ks[0], (head_num, head_dim, model_dim), jnp.float32)
    wk = 0.1 * jax.random.normal(ks[1], (head_num, head_dim, model_dim), jnp.float32)
    wv = 0.1 * jax.random.normal(ks[2], (head_num, head_dim, model_dim), jnp.float32)
    bv = 0.1 * jax.random.normal(ks[3], (head_num, 1, head_dim), jnp.float32)

    sa_stack = jax.random.normal(ks[4], (num_agent, batch, model_dim), jnp.float32)
    s_stack = jax.random.normal(ks[5], (num_agent, batch, model_dim), jnp.float32)
    sa_inputs = [sa_stack[a] for a in range(num_agent)]
    s_inputs = [s_stack[a] for a in range(num_agent)]

    all_atten_values, reg_atten = multi_head_attention_forward(
        sa_inputs, s_inputs, wq, wk, wv, bv)
    jax.block_until_ready(all_atten_values[0][0])

    # Verify against a pure-JAX transliteration of the PyTorch forward. The
    # reference is fed the same bf16-rounded activations/weights that the kernel
    # DMAs (both paths accumulate in f32), so the comparison isolates kernel math
    # rather than the intentional bf16 input quantization.
    def bf16_round(x):
        return x.astype(jnp.bfloat16).astype(jnp.float32)

    ref_vals = _reference_forward(
        [bf16_round(x) for x in sa_inputs],
        [bf16_round(x) for x in s_inputs],
        bf16_round(wq), bf16_round(wk), bf16_round(wv), bv)

    for a in range(num_agent):
        for h in range(head_num):
            assert all_atten_values[a][h].shape == (batch, head_dim)
            if not jnp.allclose(all_atten_values[a][h], ref_vals[a][h],
                                rtol=2e-2, atol=2e-3):
                err = jnp.max(jnp.abs(all_atten_values[a][h] - ref_vals[a][h]))
                raise AssertionError(f"mismatch at agent {a}, head {h}: max|d|={err}")
    assert len(reg_atten) == num_agent

    print("KERNEL_OK")
</pallas_src>

<mosaic_0001>
module attributes {stable_mosaic.version = 11 : i64} {
  func.func @kernel(%arg0: i32, %arg1: memref<1x2x24x32xbf16, #tpu.memory_space<vmem>>, %arg2: memref<32x128xbf16, #tpu.memory_space<vmem>>, %arg3: memref<32x256xbf16, #tpu.memory_space<vmem>>, %arg4: memref<1x256xf32, #tpu.memory_space<vmem>>, %arg5: memref<24x24xf32, #tpu.memory_space<vmem>>, %arg6: memref<1x24x128xf32, #tpu.memory_space<vmem>>) attributes {dimension_semantics = [#tpu.dimension_semantics<parallel>], iteration_bounds = array<i64: 1>, scalar_prefetch = 0 : i64, scratch_operands = 0 : i64, tpu.core_type = #tpu.core_type<tc>, window_params = [{transform_indices = @transform_0, window_bounds = array<i64: 1, 2, 24, 32>}, {pipeline_mode = #tpu.pipeline_mode<synchronous>, transform_indices = @transform_1, window_bounds = array<i64: 32, 128>}, {pipeline_mode = #tpu.pipeline_mode<synchronous>, transform_indices = @transform_2, window_bounds = array<i64: 32, 256>}, {pipeline_mode = #tpu.pipeline_mode<synchronous>, transform_indices = @transform_3, window_bounds = array<i64: 1, 256>}, {pipeline_mode = #tpu.pipeline_mode<synchronous>, transform_indices = @transform_4, window_bounds = array<i64: 24, 24>}, {transform_indices = @transform_5, window_bounds = array<i64: 1, 24, 128>}]} {
    %c0 = arith.constant 0 : index
    %c0_0 = arith.constant 0 : index
    %c0_1 = arith.constant 0 : index
    %c0_2 = arith.constant 0 : index
    %0 = vector.load %arg1[%c0, %c0_0, %c0_1, %c0_2] : memref<1x2x24x32xbf16, #tpu.memory_space<vmem>>, vector<1x1x24x32xbf16>
    %1 = vector.shape_cast %0 : vector<1x1x24x32xbf16> to vector<24x32xbf16>
    %c0_3 = arith.constant 0 : index
    %c1 = arith.constant 1 : index
    %c0_4 = arith.constant 0 : index
    %c0_5 = arith.constant 0 : index
    %2 = vector.load %arg1[%c0_3, %c1, %c0_4, %c0_5] : memref<1x2x24x32xbf16, #tpu.memory_space<vmem>>, vector<1x1x24x32xbf16>
    %3 = vector.shape_cast %2 : vector<1x1x24x32xbf16> to vector<24x32xbf16>
    %c0_6 = arith.constant 0 : index
    %c0_7 = arith.constant 0 : index
    %4 = vector.load %arg2[%c0_6, %c0_7] : memref<32x128xbf16, #tpu.memory_space<vmem>>, vector<32x128xbf16>
    %cst = arith.constant dense<0.000000e+00> : vector<24x128xf32>
    %5 = tpu.matmul %1, %4, %cst {dimension_numbers = #tpu.dot_dimension_numbers<[1], [0], [0], [1], [0, 0, 1, 1], [], []>} : vector<24x32xbf16>, vector<32x128xbf16>, vector<24x128xf32> -> vector<24x128xf32>
    %c0_8 = arith.constant 0 : index
    %c0_9 = arith.constant 0 : index
    %6 = vector.load %arg3[%c0_8, %c0_9] : memref<32x256xbf16, #tpu.memory_space<vmem>>, vector<32x256xbf16>
    %cst_10 = arith.constant dense<0.000000e+00> : vector<24x256xf32>
    %7 = tpu.matmul %3, %6, %cst_10 {dimension_numbers = #tpu.dot_dimension_numbers<[1], [0], [0], [1], [0, 0, 1, 1], [], []>} : vector<24x32xbf16>, vector<32x256xbf16>, vector<24x256xf32> -> vector<24x256xf32>
    %c0_11 = arith.constant 0 : index
    %c0_12 = arith.constant 0 : index
    %8 = vector.load %arg4[%c0_11, %c0_12] : memref<1x256xf32, #tpu.memory_space<vmem>>, vector<1x256xf32>
    %9 = vector.broadcast %8 : vector<1x256xf32> to vector<24x256xf32>
    %10 = arith.addf %7, %9 : vector<24x256xf32>
    %11 = vector.extract_strided_slice %10 {offsets = [0, 0], sizes = [24, 128], strides = [1, 1]} : vector<24x256xf32> to vector<24x128xf32>
    %12 = vector.extract_strided_slice %10 {offsets = [0, 128], sizes = [24, 128], strides = [1, 1]} : vector<24x256xf32> to vector<24x128xf32>
    %cst_13 = arith.constant 0.000000e+00 : f32
    %13 = vector.broadcast %cst_13 : f32 to vector<24x128xf32>
    %14 = arith.cmpf oge, %12, %13 : vector<24x128xf32>
    %cst_14 = arith.constant 0.00999999977 : f32
    %15 = vector.broadcast %cst_14 : f32 to vector<24x128xf32>
    %16 = arith.mulf %15, %12 : vector<24x128xf32>
    %17 = arith.select %14, %12, %16 : vector<24x128xi1>, vector<24x128xf32>
    %c0_15 = arith.constant 0 : index
    %c0_16 = arith.constant 0 : index
    %18 = vector.load %arg5[%c0_15, %c0_16] : memref<24x24xf32, #tpu.memory_space<vmem>>, vector<24x24xf32>
    %19 = vector.extract_strided_slice %5 {offsets = [0, 0], sizes = [24, 8], strides = [1, 1]} : vector<24x128xf32> to vector<24x8xf32>
    %20 = vector.extract_strided_slice %11 {offsets = [0, 0], sizes = [24, 8], strides = [1, 1]} : vector<24x128xf32> to vector<24x8xf32>
    %21 = vector.extract_strided_slice %17 {offsets = [0, 0], sizes = [24, 8], strides = [1, 1]} : vector<24x128xf32> to vector<24x8xf32>
    %cst_17 = arith.constant dense<0.000000e+00> : vector<24x24xf32>
    %22 = tpu.matmul %19, %20, %cst_17 {dimension_numbers = #tpu.dot_dimension_numbers<[1], [1], [0], [0], [0, 0, 1, 0], [], []>} : vector<24x8xf32>, vector<24x8xf32>, vector<24x24xf32> -> vector<24x24xf32>
    %cst_18 = arith.constant 0.353553385 : f32
    %23 = vector.broadcast %cst_18 : f32 to vector<24x24xf32>
    %24 = arith.mulf %23, %22 : vector<24x24xf32>
    %25 = arith.addf %24, %18 : vector<24x24xf32>
    %cst_19 = arith.constant dense<0xFF800000> : vector<24xf32>
    %26 = vector.multi_reduction <maximumf>, %25, %cst_19 [1] : vector<24x24xf32> to vector<24xf32>
    %27 = vector.shape_cast %26 : vector<24xf32> to vector<24x1xf32>
    %28 = vector.broadcast %27 : vector<24x1xf32> to vector<24x24xf32>
    %29 = arith.subf %25, %28 : vector<24x24xf32>
    %30 = math.exp %29 : vector<24x24xf32>
    %cst_20 = arith.constant dense<0.000000e+00> : vector<24xf32>
    %31 = vector.multi_reduction <add>, %30, %cst_20 [1] : vector<24x24xf32> to vector<24xf32>
    %32 = vector.shape_cast %31 : vector<24xf32> to vector<24x1xf32>
    %33 = tpu.reciprocal %32 : vector<24x1xf32> -> vector<24x1xf32>
    %34 = vector.broadcast %33 : vector<24x1xf32> to vector<24x24xf32>
    %35 = arith.mulf %30, %34 : vector<24x24xf32>
    %cst_21 = arith.constant dense<0.000000e+00> : vector<24x8xf32>
    %36 = tpu.matmul %35, %21, %cst_21 {dimension_numbers = #tpu.dot_dimension_numbers<[1], [0], [0], [1], [0, 0, 1, 1], [], []>} : vector<24x24xf32>, vector<24x8xf32>, vector<24x8xf32> -> vector<24x8xf32>
    %37 = vector.extract_strided_slice %5 {offsets = [0, 8], sizes = [24, 8], strides = [1, 1]} : vector<24x128xf32> to vector<24x8xf32>
    %38 = vector.extract_strided_slice %11 {offsets = [0, 8], sizes = [24, 8], strides = [1, 1]} : vector<24x128xf32> to vector<24x8xf32>
    %39 = vector.extract_strided_slice %17 {offsets = [0, 8], sizes = [24, 8], strides = [1, 1]} : vector<24x128xf32> to vector<24x8xf32>
    %cst_22 = arith.constant dense<0.000000e+00> : vector<24x24xf32>
    %40 = tpu.matmul %37, %38, %cst_22 {dimension_numbers = #tpu.dot_dimension_numbers<[1], [1], [0], [0], [0, 0, 1, 0], [], []>} : vector<24x8xf32>, vector<24x8xf32>, vector<24x24xf32> -> vector<24x24xf32>
    %cst_23 = arith.constant 0.353553385 : f32
    %41 = vector.broadcast %cst_23 : f32 to vector<24x24xf32>
    %42 = arith.mulf %41, %40 : vector<24x24xf32>
    %43 = arith.addf %42, %18 : vector<24x24xf32>
    %cst_24 = arith.constant dense<0xFF800000> : vector<24xf32>
    %44 = vector.multi_reduction <maximumf>, %43, %cst_24 [1] : vector<24x24xf32> to vector<24xf32>
    %45 = vector.shape_cast %44 : vector<24xf32> to vector<24x1xf32>
    %46 = vector.broadcast %45 : vector<24x1xf32> to vector<24x24xf32>
    %47 = arith.subf %43, %46 : vector<24x24xf32>
    %48 = math.exp %47 : vector<24x24xf32>
    %cst_25 = arith.constant dense<0.000000e+00> : vector<24xf32>
    %49 = vector.multi_reduction <add>, %48, %cst_25 [1] : vector<24x24xf32> to vector<24xf32>
    %50 = vector.shape_cast %49 : vector<24xf32> to vector<24x1xf32>
    %51 = tpu.reciprocal %50 : vector<24x1xf32> -> vector<24x1xf32>
    %52 = vector.broadcast %51 : vector<24x1xf32> to vector<24x24xf32>
    %53 = arith.mulf %48, %52 : vector<24x24xf32>
    %cst_26 = arith.constant dense<0.000000e+00> : vector<24x8xf32>
    %54 = tpu.matmul %53, %39, %cst_26 {dimension_numbers = #tpu.dot_dimension_numbers<[1], [0], [0], [1], [0, 0, 1, 1], [], []>} : vector<24x24xf32>, vector<24x8xf32>, vector<24x8xf32> -> vector<24x8xf32>
    %55 = vector.extract_strided_slice %5 {offsets = [0, 16], sizes = [24, 8], strides = [1, 1]} : vector<24x128xf32> to vector<24x8xf32>
    %56 = vector.extract_strided_slice %11 {offsets = [0, 16], sizes = [24, 8], strides = [1, 1]} : vector<24x128xf32> to vector<24x8xf32>
    %57 = vector.extract_strided_slice %17 {offsets = [0, 16], sizes = [24, 8], strides = [1, 1]} : vector<24x128xf32> to vector<24x8xf32>
    %cst_27 = arith.constant dense<0.000000e+00> : vector<24x24xf32>
    %58 = tpu.matmul %55, %56, %cst_27 {dimension_numbers = #tpu.dot_dimension_numbers<[1], [1], [0], [0], [0, 0, 1, 0], [], []>} : vector<24x8xf32>, vector<24x8xf32>, vector<24x24xf32> -> vector<24x24xf32>
    %cst_28 = arith.constant 0.353553385 : f32
    %59 = vector.broadcast %cst_28 : f32 to vector<24x24xf32>
    %60 = arith.mulf %59, %58 : vector<24x24xf32>
    %61 = arith.addf %60, %18 : vector<24x24xf32>
    %cst_29 = arith.constant dense<0xFF800000> : vector<24xf32>
    %62 = vector.multi_reduction <maximumf>, %61, %cst_29 [1] : vector<24x24xf32> to vector<24xf32>
    %63 = vector.shape_cast %62 : vector<24xf32> to vector<24x1xf32>
    %64 = vector.broadcast %63 : vector<24x1xf32> to vector<24x24xf32>
    %65 = arith.subf %61, %64 : vector<24x24xf32>
    %66 = math.exp %65 : vector<24x24xf32>
    %cst_30 = arith.constant dense<0.000000e+00> : vector<24xf32>
    %67 = vector.multi_reduction <add>, %66, %cst_30 [1] : vector<24x24xf32> to vector<24xf32>
    %68 = vector.shape_cast %67 : vector<24xf32> to vector<24x1xf32>
    %69 = tpu.reciprocal %68 : vector<24x1xf32> -> vector<24x1xf32>
    %70 = vector.broadcast %69 : vector<24x1xf32> to vector<24x24xf32>
    %71 = arith.mulf %66, %70 : vector<24x24xf32>
    %cst_31 = arith.constant dense<0.000000e+00> : vector<24x8xf32>
    %72 = tpu.matmul %71, %57, %cst_31 {dimension_numbers = #tpu.dot_dimension_numbers<[1], [0], [0], [1], [0, 0, 1, 1], [], []>} : vector<24x24xf32>, vector<24x8xf32>, vector<24x8xf32> -> vector<24x8xf32>
    %73 = vector.extract_strided_slice %5 {offsets = [0, 24], sizes = [24, 8], strides = [1, 1]} : vector<24x128xf32> to vector<24x8xf32>
    %74 = vector.extract_strided_slice %11 {offsets = [0, 24], sizes = [24, 8], strides = [1, 1]} : vector<24x128xf32> to vector<24x8xf32>
    %75 = vector.extract_strided_slice %17 {offsets = [0, 24], sizes = [24, 8], strides = [1, 1]} : vector<24x128xf32> to vector<24x8xf32>
    %cst_32 = arith.constant dense<0.000000e+00> : vector<24x24xf32>
    %76 = tpu.matmul %73, %74, %cst_32 {dimension_numbers = #tpu.dot_dimension_numbers<[1], [1], [0], [0], [0, 0, 1, 0], [], []>} : vector<24x8xf32>, vector<24x8xf32>, vector<24x24xf32> -> vector<24x24xf32>
    %cst_33 = arith.constant 0.353553385 : f32
    %77 = vector.broadcast %cst_33 : f32 to vector<24x24xf32>
    %78 = arith.mulf %77, %76 : vector<24x24xf32>
    %79 = arith.addf %78, %18 : vector<24x24xf32>
    %cst_34 = arith.constant dense<0xFF800000> : vector<24xf32>
    %80 = vector.multi_reduction <maximumf>, %79, %cst_34 [1] : vector<24x24xf32> to vector<24xf32>
    %81 = vector.shape_cast %80 : vector<24xf32> to vector<24x1xf32>
    %82 = vector.broadcast %81 : vector<24x1xf32> to vector<24x24xf32>
    %83 = arith.subf %79, %82 : vector<24x24xf32>
    %84 = math.exp %83 : vector<24x24xf32>
    %cst_35 = arith.constant dense<0.000000e+00> : vector<24xf32>
    %85 = vector.multi_reduction <add>, %84, %cst_35 [1] : vector<24x24xf32> to vector<24xf32>
    %86 = vector.shape_cast %85 : vector<24xf32> to vector<24x1xf32>
    %87 = tpu.reciprocal %86 : vector<24x1xf32> -> vector<24x1xf32>
    %88 = vector.broadcast %87 : vector<24x1xf32> to vector<24x24xf32>
    %89 = arith.mulf %84, %88 : vector<24x24xf32>
    %cst_36 = arith.constant dense<0.000000e+00> : vector<24x8xf32>
    %90 = tpu.matmul %89, %75, %cst_36 {dimension_numbers = #tpu.dot_dimension_numbers<[1], [0], [0], [1], [0, 0, 1, 1], [], []>} : vector<24x24xf32>, vector<24x8xf32>, vector<24x8xf32> -> vector<24x8xf32>
    %cst_37 = arith.constant 0.000000e+00 : f32
    %91 = vector.broadcast %cst_37 : f32 to vector<24x96xf32>
    %92 = tpu.concatenate %36, %54, %72, %90, %91 in 1 : vector<24x8xf32>, vector<24x8xf32>, vector<24x8xf32>, vector<24x8xf32>, vector<24x96xf32> -> vector<24x128xf32>
    %c0_38 = arith.constant 0 : index
    %c0_39 = arith.constant 0 : index
    %c0_40 = arith.constant 0 : index
    %93 = vector.load %arg6[%c0_38, %c0_39, %c0_40] : memref<1x24x128xf32, #tpu.memory_space<vmem>>, vector<1x24x128xf32>
    %94 = vector.shape_cast %93 : vector<1x24x128xf32> to vector<24x128xf32>
    %95 = vector.shape_cast %92 : vector<24x128xf32> to vector<1x24x128xf32>
    tpu.vector_store %arg6[%c0_38, %c0_39, %c0_40], %95 {strides = array<i32>} : memref<1x24x128xf32, #tpu.memory_space<vmem>>, vector<1x24x128xf32>,
    return
  }
  func.func @transform_0(%arg0: i32) -> (i32, i32, i32, i32) {
    %c0_i32 = arith.constant 0 : i32
    %c0_i32_0 = arith.constant 0 : i32
    %c0_i32_1 = arith.constant 0 : i32
    %c0_i32_2 = arith.constant 0 : i32
    return %arg0, %c0_i32, %c0_i32_0, %c0_i32_1 : i32, i32, i32, i32
  }
  func.func @transform_1(%arg0: i32) -> (i32, i32) {
    %c0_i32 = arith.constant 0 : i32
    %c0_i32_0 = arith.constant 0 : i32
    %c0_i32_1 = arith.constant 0 : i32
    return %c0_i32, %c0_i32_0 : i32, i32
  }
  func.func @transform_2(%arg0: i32) -> (i32, i32) {
    %c0_i32 = arith.constant 0 : i32
    %c0_i32_0 = arith.constant 0 : i32
    %c0_i32_1 = arith.constant 0 : i32
    return %c0_i32, %c0_i32_0 : i32, i32
  }
  func.func @transform_3(%arg0: i32) -> (i32, i32) {
    %c0_i32 = arith.constant 0 : i32
    %c0_i32_0 = arith.constant 0 : i32
    %c0_i32_1 = arith.constant 0 : i32
    return %c0_i32, %c0_i32_0 : i32, i32
  }
  func.func @transform_4(%arg0: i32) -> (i32, i32) {
    %c0_i32 = arith.constant 0 : i32
    %c0_i32_0 = arith.constant 0 : i32
    %c0_i32_1 = arith.constant 0 : i32
    return %c0_i32, %c0_i32_0 : i32, i32
  }
  func.func @transform_5(%arg0: i32) -> (i32, i32, i32) {
    %c0_i32 = arith.constant 0 : i32
    %c0_i32_0 = arith.constant 0 : i32
    %c0_i32_1 = arith.constant 0 : i32
    return %arg0, %c0_i32, %c0_i32_0 : i32, i32, i32
  }
}

</mosaic_0001>

<bundles_post_ra>
// kernel: tpu_custom_call.1
= control target key start
LH: loop header
LB: loop body
LE: loop exit
PB: predicated region body
PF: predicated region fallthrough
CT: control target
= control target key end

     0   :  { %10 = vsyncpa [#allocation3], 0  ;;  %s2097_s0 = inlined_call_operand.hbm [shape: bf16[1,2,24,32], index: 0, kind: input, shape index: {}]   ;;  %s2098_s1 = inlined_call_operand.hbm [shape: bf16[32,128], index: 1, kind: input, shape index: {}]   ;;  %s2099_s2 = inlined_call_operand.hbm [shape: bf16[32,256], index: 2, kind: input, shape index: {}]   ;;  %s2100_s3 = inlined_call_operand.vmem [shape: f32[1,256], index: 3, kind: input, shape index: {}]   ;;  %s2101_s4 = inlined_call_operand.hbm [shape: f32[24,24], index: 4, kind: input, shape index: {}]   ;;  %s2102_s5 = inlined_call_operand.hbm [shape: f32[1,24,128], index: 5, kind: output, shape index: {}]  }
   0x1   :  { %11 = vsyncpa [#allocation6], 0 }
   0x2   :  { %12 = vsyncpa [#allocation9], 0 }
   0x3   :  { %13 = vsyncpa [#allocation4], 0  ;;  %s1716_s18 = smov [#allocation5]   ;;  %s1717_s20 = smov [#allocation2]  }
   0x4   :  { %s31_s19 = sshll.u32 %s1716_s18, 4  ;;  %s19_s21 = sshll.u32 %s1717_s20, 4  ;;  %s32_s19 = int_to_ptr.vmem [resolvable:$true] %s31_s19  ;;  %s20_s21 = int_to_ptr.vmem [resolvable:$true] %s19_s21 }
   0x5   :  { %s1616_s22 = scalar_lea.vmem %s32_s19, 256  ;;  %p1621_p1 = scmp.lt.s32.totalorder %s32_s19, %s32_s19 }
   0x6   :  { %p1617_p0 = scmp.ne.s32.totalorder %s32_s19, %s1616_s22  ;;  %p1622_p2 = scmp.lt.s32.totalorder %s1616_s22, %s1616_s22 }
   0x8   :  { %p1623_p3 = por %p1622_p2, %p1621_p1 }
   0xa   :  { %p1624_p4 = pnand %p1623_p3, %p1617_p0 }
   0xc   :  { %1627 = shalt.err (!%p1624_p4)
}
   0xd   :  { %s1718_s23 = smov 64   ;;  %s1719_s24 = smov 4  }
   0xe   :  { %37 = dma.hbm_to_vmem [thread:$0]  %s2098_s1, 256, %s32_s19, [#allocation6], %s1718_s23, %s1718_s23, %s1719_s24  }
   0xf   :  { %s1636_s27 = scalar_lea.vmem %s20_s21, 384  ;;  %p1641_p6 = scmp.lt.s32.totalorder %s20_s21, %s20_s21 }
  0x10   :  { %p1637_p5 = scmp.ne.s32.totalorder %s20_s21, %s1636_s27  ;;  %p1642_p7 = scmp.lt.s32.totalorder %s1636_s27, %s1636_s27 }
  0x12   :  { %p1643_p8 = por %p1642_p7, %p1641_p6 }
  0x14   :  { %p1644_p9 = pnand %p1643_p8, %p1637_p5 }
  0x16   :  { %1647 = shalt.err (!%p1644_p9)
}
  0x17   :  { %25 = dma.hbm_to_vmem [thread:$0]  %s2097_s0, 384, %s20_s21, [#allocation3], %s1718_s23, %s1718_s23, %s1719_s24  }
  0x18   :  { %s1720_s30 = smov [#allocation7]  }
  0x19   :  { %s43_s6 = sshll.u32 %s1720_s30, 4  ;;  %s44_s6 = int_to_ptr.vmem [resolvable:$true] %s43_s6 }
  0x1a   :  { %s1656_s7 = scalar_lea.vmem %s44_s6, 512  ;;  %p1661_p11 = scmp.lt.s32.totalorder %s44_s6, %s44_s6 }
  0x1b   :  { %p1657_p10 = scmp.ne.s32.totalorder %s44_s6, %s1656_s7  ;;  %p1662_p12 = scmp.lt.s32.totalorder %s1656_s7, %s1656_s7 }
  0x1d   :  { %p1663_p13 = por %p1662_p12, %p1661_p11 }
  0x1f   :  { %p1664_p0 = pnand %p1663_p13, %p1657_p10 }
  0x21   :  { %1667 = shalt.err (!%p1664_p0)
}
  0x22   :  { %s1721_s1 = smov 128   ;;  %s1722_s8 = smov 8  }
  0x23   :  { %49 = dma.hbm_to_vmem [thread:$0]  %s2099_s2, 512, %s44_s6, [#allocation6], %s1721_s1, %s1721_s1, %s1722_s8  }
  0x24   :  { %s1723_s0 = smov [#allocation8]  }
  0x25   :  { %s57_s11 = sshll.u32 %s1723_s0, 4  ;;  %s58_s11 = int_to_ptr.vmem [resolvable:$true] %s57_s11 }
  0x26   :  { %s1676_s12 = scalar_lea.vmem %s58_s11, 384  ;;  %p1681_p2 = scmp.lt.s32.totalorder %s58_s11, %s58_s11 }
  0x27   :  { %p1677_p1 = scmp.ne.s32.totalorder %s58_s11, %s1676_s12  ;;  %p1682_p3 = scmp.lt.s32.totalorder %s1676_s12, %s1676_s12 }
  0x29   :  { %p1683_p4 = por %p1682_p3, %p1681_p2 }
  0x2b   :  { %p1684_p5 = pnand %p1683_p4, %p1677_p1 }
  0x2d   :  { %1687 = shalt.err (!%p1684_p5)
}
  0x2e   :  { %63 = dma.hbm_to_vmem [thread:$0]  %s2101_s4, 384, %s58_s11, [#allocation9], %s1721_s1, %s1721_s1, %s1722_s8  }
  0x2f   :  { %1708 = dma.done.wait [#allocation3], 384  }
  0x30   :  { %1709 = vsyncadd [#allocation3], 4294966912 }
  0x31   :  { %1710 = dma.done.wait [#allocation6], 768  }
  0x32   :  { %1711 = vsyncadd [#allocation6], 4294966528 }
  0x33   :  { %1712 = dma.done.wait [#allocation9], 384  }
  0x34   :  { %1713 = vsyncadd [#allocation9], 4294966912  ;;  %v1724_v0 = vmov 0   ;;  %v1548_v1 = vld [vmem:[#allocation7 + $0x14] ss:$8 sps:$4 sm:$0xff]   ;;  %v1556_v7 = vld [vmem:[#allocation2 + $0xc] sm:$0xff]   ;;  %v169_v12 = vlaneseq }
  0x35   :  { %245 = vmatprep.mubr.bf16.mxu1 %v1724_v0  ;;  %v1550_v2 = vld [vmem:[#allocation7 + $0x10] ss:$8 sps:$4 sm:$0xff]   ;;  %225 = vmatprep.subr.bf16.mxu1 %v1548_v1  ;;  %v1552_v4 = vld [vmem:[#allocation7 + $0x4] ss:$8 sps:$4 sm:$0xff]   ;;  %v1554_v5 = vld [vmem:[#allocation7] ss:$8 sps:$4 sm:$0xff]  }
  0x36   :  { %v1551_v3 = vld [vmem:[#allocation5 + $0x8] sm:$0xff]   ;;  %226 = vmatpush1.bf16.msra.mxu1 %v1550_v2  ;;  %v1555_v6 = vld [vmem:[#allocation5] sm:$0xff]   ;;  %vm108_vm0 = vcmask 261120   ;;  %v1558_v9 = vld [vmem:[#allocation2 + $0x8] ss:$0 sps:$4 sm:$0xff]   ;;  %v1725_v11 = vmov 0.0  }
  0x37   :  { %1403 = vmatprep.subr.bf16.mxu0 %v1551_v3  ;;  %227 = vmatprep.subr.bf16.mxu1 %v1552_v4  ;;  %v1557_v8 = vld [vmem:[#allocation2] sm:$0xff]   ;;  %v1559_v10 = vld [vmem:[#allocation2 + $0x14] ss:$0 sps:$4 sm:$0xff]   ;;  %vm1726_vm1 = vmmov 0   ;;  %v170_v13 = vshrl.u32 %v169_v12, 7  ;;  %s1727_s15 = smov 120  }
  0x38   :  { %1404 = vmatpush3.bf16.msra.mxu0 %v1551_v3  ;;  %1407 = vmatprep.mubr.msk.bf16.mxu0 %vm108_vm0, %v1557_v8  ;;  %v167_v15 = vld [vmem:[%s2100_s3] sm:$0x3]  ;;  %vm276_vm2 = vcmask 64512   ;;  %s1728_s3 = smov 112   ;;  %s1729_s16 = smov 104   ;;  %v273_v62 = vld [vmem:[#allocation8] sm:$0xff] }
  0x39   :  { %1405 = vmatprep.subr.bf16.mxu0 %v1555_v6  ;;  %v171_v14 = vsub.s32 0, %v170_v13  ;;  %v175_v21 = vsub.s32 1, %v170_v13  ;;  %vm381_vm6 = vcmask 195584   ;;  %v274_v3 = vld [vmem:[#allocation8 + $0x8] sm:$0xff]  ;;  %s1730_s17 = smov 16   ;;  %s1731_s18 = smov 24  }
  0x3a   :  { %228 = vmatpush1.bf16.msra.mxu1 %v1554_v5  ;;  %vm1269_vm7 = vcmask 130048   ;;  %s1732_s19 = smov [#allocation10]  }
  0x3b   :  { %1426 = vmatprep.subr.mxu1 %v1725_v11  ;;  %v172_v16 = vrot.slane %v167_v15, %v171_v14  ;;  %v176_v26 = vrot.slane %v167_v15, %v175_v21  ;;  %s1287_s20 = sshll.u32 %s1732_s19, 4  ;;  %s1288_s20 = int_to_ptr.vmem [resolvable:$true] %s1287_s20 }
  0x3c   :  { %1406 = vmatpush3.bf16.msra.mxu0 %v1555_v6  ;;  %s1688_s21 = scalar_lea.vmem %s1288_s20, 384  ;;  %p1693_p7 = scmp.lt.s32.totalorder %s1288_s20, %s1288_s20 }
  0x3d   :  { %1313 = vmatmul.mubr.msk.bf16.vlgmr.msra.gmra.mxu1 %vm108_vm0, %v1556_v7  ;;  %1411 = vmatprep.subr.mxu0 %v1725_v11  ;;  %p1689_p6 = scmp.ne.s32.totalorder %s1288_s20, %s1688_s21  ;;  %p1694_p8 = scmp.lt.s32.totalorder %s1688_s21, %s1688_s21 }
  0x3e   :  { %255 = vmatprep.mubr.bf16.mxu1 %v1724_v0 }
  0x3f   :  { %1408 = vmatmul.mubr.msk.bf16.vlgmr.msra.gmra.mxu0 %vm108_vm0, %v1558_v9  ;;  %v275_v9 = vld [vmem:[#allocation8 + $0x10] sm:$0xff]  ;;  %p1695_p9 = por %p1694_p8, %p1693_p7 }
  0x40   :  { %1417 = vmatprep.mubr.msk.f32.mxu0 %vm1726_vm1, %v1725_v11 }
  0x41   :  { %p1696_p10 = pnand %p1695_p9, %p1689_p6 }
  0x45   :  { %1314 = vmatmul.mubr.msk.bf16.gmra.mxu1 %vm108_vm0, %v1559_v10 }
  0x46   :  { %1432 = vmatprep.mubr.msk.f32.mxu1 %vm1726_vm1, %v1725_v11 }
  0xfd   :  { %v247_v17 = vpop.f32.mrf.mxu1 }
  0xfe   :  { %v1794_v18 = vadd.f32 %v247_v17, %v172_v16 }
  0xff   :  { %v249_v19 = vpop.f32.mrf.mxu1  ;;  %v1409_v20 = vpop.f32.mrf.mxu0 }
 0x100   :  { %510 = vrot.lane.b32.xlu1 %v1794_v18, %s1727_s15  ;;  %v250_v33 = vadd.f32 %v249_v19, %v176_v26 }
 0x101   :  { %v251_v22 = vpop.f32.mrf.mxu1  ;;  %v149_v23 = vpop.f32.mrf.mxu0 }
 0x102   :  { %v252_v35 = vadd.f32 %v251_v22, %v172_v16  ;;  %v267_v40 = vmul.f32 0.01, %v250_v33  ;;  %vm264_vm5 = vcmp.ge.f32.partialorder %v250_v33, 0.0 }
 0x103   :  { %v253_v24 = vpop.f32.mrf.mxu1  ;;  %v1410_v25 = vpop.f32.mrf.mxu0 }
 0x104   :  { %504 = vrot.lane.b32.xlu1 %v149_v23, %s1727_s15  ;;  %v254_v28 = vadd.f32 %v253_v24, %v176_v26  ;;  %v1819_v42 = vsel %vm264_vm5, %v250_v33, %v267_v40 }
 0x105   :  { %v257_v27 = vpop.f32.mrf.mxu1  ;;  %v152_v30 = vpop.f32.mrf.mxu0 }
 0x106   :  { %v258_v29 = vadd.f32 %v257_v27, %v172_v16  ;;  %v268_v36 = vmul.f32 0.01, %v254_v28  ;;  %vm265_vm4 = vcmp.ge.f32.partialorder %v254_v28, 0.0 }
 0x107   :  { %v259_v31 = vpop.f32.mrf.mxu1 }
 0x108   :  { %v260_v32 = vadd.f32 %v259_v31, %v176_v26  ;;  %514 = vrot.lane.b32.xlu0 %v258_v29, %s1727_s15  ;;  %1412 = vmatpush3.xpose.msk.msra.mxu0 %vm276_vm2, %v258_v29  ;;  %v1811_v41 = vsel %vm265_vm4, %v254_v28, %v268_v36 }
 0x109   :  { %506 = vrot.lane.b32.xlu1 %v152_v30, %s1727_s15  ;;  %v261_v34 = vpop.f32.mrf.mxu1  ;;  %1413 = vmatprep.subr.mxu0 %v1725_v11 }
 0x10a   :  { %vm266_vm3 = vcmp.ge.f32.partialorder %v260_v32, 0.0  ;;  %v269_v37 = vmul.f32 0.01, %v260_v32 }
 0x10b   :  { %v262_v38 = vpop.f32.mrf.mxu1 }
 0x10c   :  { %512 = vrot.lane.b32.xlu0 %v252_v35, %s1727_s15  ;;  %1414 = vmatpush3.xpose.msk.msra.mxu0 %vm276_vm2, %v252_v35  ;;  %v1805_v39 = vsel %vm266_vm3, %v260_v32, %v269_v37 }
 0x10d   :  { %508 = vrot.lane.b32.xlu1 %v1409_v20, %s1727_s15  ;;  %1427 = vmatpush3.msra.mxu1 %v1805_v39 }
 0x10e   :  { %1428 = vmatprep.subr.mxu1 %v1725_v11  ;;  %1415 = vmatprep.subr.mxu0 %v1725_v11 }
 0x10f   :  { %1429 = vmatpush3.msra.mxu1 %v1811_v41 }
 0x110   :  { %1430 = vmatprep.subr.mxu1 %v1725_v11  ;;  %758 = vrot.lane.b32.xlu0 %v258_v29, %s1728_s3 }
 0x111   :  { %1416 = vmatpush3.xpose.msk.msra.mxu0 %vm276_vm2, %v1794_v18  ;;  %748 = vrot.lane.b32.xlu1 %v149_v23, %s1728_s3 }
 0x112   :  { %1431 = vmatpush3.msra.mxu1 %v1819_v42  ;;  %1441 = vmatprep.subr.mxu0 %v1725_v11 }
 0x113   :  { %1456 = vmatprep.subr.mxu1 %v1725_v11 }
 0x114   :  { %1418 = vmatmul.mubr.msk.f32.vlgmr.msra.gmra.mxu0 %vm276_vm2, %v149_v23  ;;  %756 = vrot.lane.b32.xlu0 %v252_v35, %s1728_s3 }
 0x115   :  { %750 = vrot.lane.b32.xlu1 %v152_v30, %s1728_s3  ;;  %1420 = vmatprep.mubr.msk.f32.mxu0 %vm1726_vm1, %v1725_v11 }
 0x118   :  { %1421 = vmatmul.mubr.msk.f32.gmra.mxu0 %vm276_vm2, %v152_v30  ;;  %754 = vrot.lane.b32.xlu0 %v1794_v18, %s1728_s3 }
 0x119   :  { %752 = vrot.lane.b32.xlu1 %v1409_v20, %s1728_s3  ;;  %1423 = vmatprep.mubr.msk.f32.mxu0 %vm1726_vm1, %v1725_v11 }
 0x11c   :  { %1424 = vmatmul.mubr.msk.f32.gmra.mxu0 %vm276_vm2, %v1409_v20  ;;  %999 = vrot.lane.b32.xlu0 %v258_v29, %s1729_s16 }
 0x11d   :  { %989 = vrot.lane.b32.xlu1 %v149_v23, %s1729_s16  ;;  %1447 = vmatprep.mubr.msk.f32.mxu0 %vm1726_vm1, %v1725_v11 }
 0x120   :  { %997 = vrot.lane.b32.xlu0 %v252_v35, %s1729_s16 }
 0x121   :  { %993 = vrot.lane.b32.xlu1 %v1409_v20, %s1729_s16 }
 0x124   :  { %995 = vrot.lane.b32.xlu0 %v1794_v18, %s1729_s16 }
 0x125   :  { %652 = vrot.lane.b32.xlu1 %v1811_v41, %s1727_s15 }
 0x128   :  { %991 = vrot.lane.b32.xlu0 %v152_v30, %s1729_s16 }
 0x12c   :  { %650 = vrot.lane.b32.xlu0 %v1819_v42, %s1727_s15 }
 0x130   :  { %654 = vrot.lane.b32.xlu0 %v1805_v39, %s1727_s15 }
 0x172   :  { %v511_v43 = vpop.permute.xlu1 %510 }
 0x176   :  { %v505_v44 = vpop.permute.xlu1 %504 }
 0x17a   :  { %v515_v45 = vpop.permute.xlu0 %514 }
 0x17b   :  { %1442 = vmatpush3.xpose.msk.msra.mxu0 %vm276_vm2, %v515_v45  ;;  %v507_v47 = vpop.permute.xlu1 %506 }
 0x17c   :  { %1443 = vmatprep.subr.mxu0 %v1725_v11 }
 0x17e   :  { %v513_v46 = vpop.permute.xlu0 %512 }
 0x17f   :  { %1444 = vmatpush3.xpose.msk.msra.mxu0 %vm276_vm2, %v513_v46  ;;  %v509_v49 = vpop.permute.xlu1 %508 }
 0x180   :  { %1445 = vmatprep.subr.mxu0 %v1725_v11 }
 0x182   :  { %v759_v48 = vpop.permute.xlu0 %758 }
 0x183   :  { %1446 = vmatpush3.xpose.msk.msra.mxu0 %vm276_vm2, %v511_v43  ;;  %v749_v52 = vpop.permute.xlu1 %748 }
 0x184   :  { %1471 = vmatprep.subr.mxu0 %v1725_v11 }
 0x186   :  { %v757_v50 = vpop.permute.xlu0 %756  ;;  %1448 = vmatmul.mubr.msk.f32.vlgmr.msra.gmra.mxu0 %vm276_vm2, %v505_v44 }
 0x187   :  { %1472 = vmatpush3.xpose.msk.msra.mxu0 %vm276_vm2, %v759_v48  ;;  %1450 = vmatprep.mubr.msk.f32.mxu0 %vm1726_vm1, %v1725_v11  ;;  %v751_v54 = vpop.permute.xlu1 %750 }
 0x188   :  { %1473 = vmatprep.subr.mxu0 %v1725_v11 }
 0x18a   :  { %v755_v51 = vpop.permute.xlu0 %754  ;;  %1451 = vmatmul.mubr.msk.f32.gmra.mxu0 %vm276_vm2, %v507_v47 }
 0x18b   :  { %1474 = vmatpush3.xpose.msk.msra.mxu0 %vm276_vm2, %v757_v50  ;;  %1453 = vmatprep.mubr.msk.f32.mxu0 %vm1726_vm1, %v1725_v11  ;;  %v753_v56 = vpop.permute.xlu1 %752 }
 0x18c   :  { %1475 = vmatprep.subr.mxu0 %v1725_v11 }
 0x18e   :  { %v1000_v53 = vpop.permute.xlu0 %999  ;;  %1454 = vmatmul.mubr.msk.f32.gmra.mxu0 %vm276_vm2, %v509_v49 }
 0x18f   :  { %1476 = vmatpush3.xpose.msk.msra.mxu0 %vm276_vm2, %v755_v51  ;;  %1477 = vmatprep.mubr.msk.f32.mxu0 %vm1726_vm1, %v1725_v11  ;;  %v990_v58 = vpop.permute.xlu1 %989 }
 0x190   :  { %1501 = vmatprep.subr.mxu0 %v1725_v11 }
 0x192   :  { %1478 = vmatmul.mubr.msk.f32.vlgmr.msra.gmra.mxu0 %vm276_vm2, %v749_v52  ;;  %v998_v55 = vpop.permute.xlu0 %997 }
 0x193   :  { %1502 = vmatpush3.xpose.msk.msra.mxu0 %vm276_vm2, %v1000_v53  ;;  %1480 = vmatprep.mubr.msk.f32.mxu0 %vm1726_vm1, %v1725_v11  ;;  %v994_v60 = vpop.permute.xlu1 %993 }
 0x194   :  { %1503 = vmatprep.subr.mxu0 %v1725_v11 }
 0x196   :  { %1481 = vmatmul.mubr.msk.f32.gmra.mxu0 %vm276_vm2, %v751_v54  ;;  %v996_v57 = vpop.permute.xlu0 %995 }
 0x197   :  { %1504 = vmatpush3.xpose.msk.msra.mxu0 %vm276_vm2, %v998_v55  ;;  %1483 = vmatprep.mubr.msk.f32.mxu0 %vm1726_vm1, %v1725_v11 }
 0x198   :  { %1505 = vmatprep.subr.mxu0 %v1725_v11 }
 0x19a   :  { %1484 = vmatmul.mubr.msk.f32.gmra.mxu0 %vm276_vm2, %v753_v56  ;;  %v992_v59 = vpop.permute.xlu0 %991 }
 0x19b   :  { %1506 = vmatpush3.xpose.msk.msra.mxu0 %vm276_vm2, %v996_v57  ;;  %1507 = vmatprep.mubr.msk.f32.mxu0 %vm1726_vm1, %v1725_v11 }
 0x19e   :  { %1508 = vmatmul.mubr.msk.f32.vlgmr.msra.gmra.mxu0 %vm276_vm2, %v990_v58 }
 0x19f   :  { %1510 = vmatprep.mubr.msk.f32.mxu0 %vm1726_vm1, %v1725_v11 }
 0x1a2   :  { %1511 = vmatmul.mubr.msk.f32.gmra.mxu0 %vm276_vm2, %v992_v59 }
 0x1a3   :  { %1513 = vmatprep.mubr.msk.f32.mxu0 %vm1726_vm1, %v1725_v11 }
 0x1a6   :  { %1514 = vmatmul.mubr.msk.f32.gmra.mxu0 %vm276_vm2, %v994_v60 }
 0x1d4   :  { %v361_v61 = vpop.f32.mrf.mxu0 }
 0x1d5   :  { %v375_v63 = vmul.f32 0.35355338, %v361_v61 }
 0x1d6   :  { %v1419_v0 = vpop.f32.mrf.mxu0 }
 0x1d7   :  { %v1893_v1 = vadd.f32 %v375_v63, %v273_v62  ;;  %v1941_v0 = vpop.permute.xlu0 %650 }
 0x1d8   :  { %v366_v2 = vpop.f32.mrf.mxu0 }
 0x1d9   :  { %v376_v4 = vmul.f32 0.35355338, %v366_v2  ;;  %v382_v5 = vsel %vm381_vm6, %v1893_v1, -inf }
 0x1da   :  { %383 = vmax.xlane.f32.xlu0 %v382_v5  ;;  %v1422_v6 = vpop.f32.mrf.mxu0 }
 0x1db   :  { %v1897_v7 = vadd.f32 %v376_v4, %v274_v3  ;;  %v1945_v2 = vpop.permute.xlu0 %654 }
 0x1dc   :  { %v371_v8 = vpop.f32.mrf.mxu0 }
 0x1dd   :  { %v377_v10 = vmul.f32 0.35355338, %v371_v8  ;;  %v385_v12 = vsel %vm381_vm6, %v1897_v7, -inf }
 0x1de   :  { %386 = vmax.xlane.f32.xlu1 %v385_v12  ;;  %v1425_v13 = vpop.f32.mrf.mxu0 }
 0x1df   :  { %v1901_v14 = vadd.f32 %v377_v10, %v275_v9 }
 0x1e1   :  { %v388_v15 = vsel %vm381_vm6, %v1901_v14, -inf }
 0x1e2   :  { %389 = vmax.xlane.f32.xlu0 %v388_v15 }
 0x246   :  { %v594_v16 = vpop.f32.mrf.mxu0 }
 0x247   :  { %v608_v17 = vmul.f32 0.35355338, %v594_v16 }
 0x248   :  { %v1449_v18 = vpop.f32.mrf.mxu0 }
 0x249   :  { %v1905_v19 = vadd.f32 %v608_v17, %v273_v62 }
 0x24a   :  { %v599_v20 = vpop.f32.mrf.mxu0 }
 0x24b   :  { %v609_v21 = vmul.f32 0.35355338, %v599_v20  ;;  %v614_v22 = vsel %vm381_vm6, %v1905_v19, -inf }
 0x24c   :  { %615 = vmax.xlane.f32.xlu0 %v614_v22  ;;  %v1452_v23 = vpop.f32.mrf.mxu0 }
 0x24d   :  { %v1909_v24 = vadd.f32 %v609_v21, %v274_v3 }
 0x24e   :  { %v604_v25 = vpop.f32.mrf.mxu0 }
 0x24f   :  { %v610_v26 = vmul.f32 0.35355338, %v604_v25  ;;  %v617_v27 = vsel %vm381_vm6, %v1909_v24, -inf }
 0x250   :  { %618 = vmax.xlane.f32.xlu1 %v617_v27  ;;  %v1455_v28 = vpop.f32.mrf.mxu0 }
 0x251   :  { %v1913_v29 = vadd.f32 %v610_v26, %v275_v9 }
 0x252   :  { %v838_v30 = vpop.f32.mrf.mxu0 }
 0x253   :  { %v852_v31 = vmul.f32 0.35355338, %v838_v30  ;;  %v620_v32 = vsel %vm381_vm6, %v1913_v29, -inf }
 0x254   :  { %621 = vmax.xlane.f32.xlu0 %v620_v32  ;;  %v1479_v33 = vpop.f32.mrf.mxu0 }
 0x255   :  { %v1917_v34 = vadd.f32 %v852_v31, %v273_v62 }
 0x256   :  { %v843_v35 = vpop.f32.mrf.mxu0 }
 0x257   :  { %v853_v36 = vmul.f32 0.35355338, %v843_v35  ;;  %v858_v37 = vsel %vm381_vm6, %v1917_v34, -inf }
 0x258   :  { %859 = vmax.xlane.f32.xlu1 %v858_v37  ;;  %v1482_v38 = vpop.f32.mrf.mxu0 }
 0x259   :  { %v1921_v40 = vadd.f32 %v853_v36, %v274_v3 }
 0x25a   :  { %v848_v43 = vpop.f32.mrf.mxu0 }
 0x25b   :  { %v854_v44 = vmul.f32 0.35355338, %v848_v43  ;;  %v861_v45 = vsel %vm381_vm6, %v1921_v40, -inf }
 0x25c   :  { %862 = vmax.xlane.f32.xlu0 %v861_v45  ;;  %v1485_v46 = vpop.f32.mrf.mxu0 }
 0x25d   :  { %v1925_v47 = vadd.f32 %v854_v44, %v275_v9 }
 0x25e   :  { %v1079_v48 = vpop.f32.mrf.mxu0 }
 0x25f   :  { %v1093_v49 = vmul.f32 0.35355338, %v1079_v48  ;;  %v864_v50 = vsel %vm381_vm6, %v1925_v47, -inf }
 0x260   :  { %865 = vmax.xlane.f32.xlu1 %v864_v50  ;;  %v1509_v51 = vpop.f32.mrf.mxu0 }
 0x261   :  { %v1929_v52 = vadd.f32 %v1093_v49, %v273_v62 }
 0x262   :  { %v1084_v53 = vpop.f32.mrf.mxu0 }
 0x263   :  { %v1094_v54 = vmul.f32 0.35355338, %v1084_v53  ;;  %v1099_v55 = vsel %vm381_vm6, %v1929_v52, -inf  ;;  %v384_v4 = vpop.xlane.xlu0 %383 }
 0x264   :  { %1100 = vmax.xlane.f32.xlu0 %v1099_v55  ;;  %v1512_v56 = vpop.f32.mrf.mxu0  ;;  %v391_v5 = vsub.f32 %v1893_v1, %v384_v4 }
 0x265   :  { %v1933_v57 = vadd.f32 %v1094_v54, %v274_v3  ;;  %v1947_v3 = vpop.permute.xlu1 %652 }
 0x266   :  { %v1089_v58 = vpop.f32.mrf.mxu0  ;;  %v394_v8 = vmul.f32 1.442695, %v391_v5 }
 0x267   :  { %v1095_v59 = vmul.f32 0.35355338, %v1089_v58  ;;  %v1102_v60 = vsel %vm381_vm6, %v1933_v57, -inf }
 0x268   :  { %1103 = vmax.xlane.f32.xlu1 %v1102_v60  ;;  %v1515_v61 = vpop.f32.mrf.mxu0  ;;  %1560 = vpow2.f32 %v394_v8 }
 0x269   :  { %v1937_v63 = vadd.f32 %v1095_v59, %v275_v9  ;;  %v387_v6 = vpop.xlane.xlu1 %386 }
 0x26a   :  { %v392_v9 = vsub.f32 %v1897_v7, %v387_v6 }
 0x26b   :  { %v1105_v62 = vsel %vm381_vm6, %v1937_v63, -inf  ;;  %v390_v1 = vpop.xlane.xlu0 %389 }
 0x26c   :  { %1106 = vmax.xlane.f32.xlu0 %v1105_v62  ;;  %v396_v10 = vmul.f32 1.442695, %v392_v9  ;;  %v393_v7 = vsub.f32 %v1901_v14, %v390_v1 }
 0x26e   :  { %1562 = vpow2.f32 %v396_v10  ;;  %v398_v17 = vmul.f32 1.442695, %v393_v7 }
 0x270   :  { %1564 = vpow2.f32 %v398_v17 }
 0x275   :  { %v1953_v12 = vpop.eup %1560 }
 0x276   :  { %v400_v13 = vsel %vm381_vm6, %v1953_v12, 0.0 }
 0x279   :  { %893 = vrot.lane.b32.xlu1 %v1811_v41, %s1728_s3 }
 0x27b   :  { %v1957_v15 = vpop.eup %1562 }
 0x27c   :  { %v403_v16 = vsel %vm381_vm6, %v1957_v15, 0.0 }
 0x27d   :  { %v1964_v18 = vpop.eup %1564 }
 0x27e   :  { %v406_v20 = vsel %vm381_vm6, %v1964_v18, 0.0 }
 0x282   :  { %895 = vrot.lane.b32.xlu0 %v1805_v39, %s1728_s3 }
 0x29d   :  { %401 = vadd.xlane.f32.xlu1 %v400_v13 }
 0x2a1   :  { %404 = vadd.xlane.f32.xlu0 %v403_v16 }
 0x2ae   :  { %891 = vrot.lane.b32.xlu1 %v1819_v42, %s1728_s3 }
 0x2d2   :  { %407 = vadd.xlane.f32.xlu1 %v406_v20 }
 0x2d5   :  { %v616_v21 = vpop.xlane.xlu0 %615 }
 0x2d6   :  { %v623_v22 = vsub.f32 %v1905_v19, %v616_v21 }
 0x2d8   :  { %v626_v23 = vmul.f32 1.442695, %v623_v22 }
 0x2d9   :  { %v619_v25 = vpop.xlane.xlu1 %618 }
 0x2da   :  { %1566 = vpow2.f32 %v626_v23  ;;  %v624_v26 = vsub.f32 %v1909_v24, %v619_v25 }
 0x2dc   :  { %v628_v27 = vmul.f32 1.442695, %v624_v26 }
 0x2dd   :  { %v622_v28 = vpop.xlane.xlu0 %621 }
 0x2de   :  { %1568 = vpow2.f32 %v628_v27  ;;  %v625_v14 = vsub.f32 %v1913_v29, %v622_v28 }
 0x2e0   :  { %v630_v30 = vmul.f32 1.442695, %v625_v14 }
 0x2e1   :  { %v860_v31 = vpop.xlane.xlu1 %859 }
 0x2e2   :  { %1570 = vpow2.f32 %v630_v30  ;;  %v867_v32 = vsub.f32 %v1917_v34, %v860_v31 }
 0x2e4   :  { %v870_v33 = vmul.f32 1.442695, %v867_v32 }
 0x2e5   :  { %v863_v36 = vpop.xlane.xlu0 %862 }
 0x2e6   :  { %1572 = vpow2.f32 %v870_v33  ;;  %v868_v59 = vsub.f32 %v1921_v40, %v863_v36 }
 0x2e7   :  { %v1972_v35 = vpop.eup %1566 }
 0x2e8   :  { %v632_v19 = vsel %vm381_vm6, %v1972_v35, 0.0  ;;  %v872_v61 = vmul.f32 1.442695, %v868_v59 }
 0x2e9   :  { %v866_v37 = vpop.xlane.xlu1 %865  ;;  %633 = vadd.xlane.f32.xlu0 %v632_v19 }
 0x2ea   :  { %v869_v24 = vsub.f32 %v1925_v47, %v866_v37 }
 0x2eb   :  { %v1977_v38 = vpop.eup %1568 }
 0x2ec   :  { %v874_v29 = vmul.f32 1.442695, %v869_v24  ;;  %v635_v43 = vsel %vm381_vm6, %v1977_v38, 0.0 }
 0x2ed   :  { %v1101_v44 = vpop.xlane.xlu0 %1100  ;;  %636 = vadd.xlane.f32.xlu1 %v635_v43 }
 0x2ee   :  { %1574 = vpow2.f32 %v874_v29  ;;  %v1108_v34 = vsub.f32 %v1929_v52, %v1101_v44 }
 0x2ef   :  { %v1982_v45 = vpop.eup %1570 }
 0x2f0   :  { %v1111_v46 = vmul.f32 1.442695, %v1108_v34  ;;  %v638_v48 = vsel %vm381_vm6, %v1982_v45, 0.0 }
 0x2f1   :  { %v1104_v49 = vpop.xlane.xlu1 %1103  ;;  %639 = vadd.xlane.f32.xlu0 %v638_v48 }
 0x2f2   :  { %1576 = vpow2.f32 %v1111_v46  ;;  %v1109_v47 = vsub.f32 %v1933_v57, %v1104_v49 }
 0x2f3   :  { %v1987_v50 = vpop.eup %1572 }
 0x2f4   :  { %v1113_v51 = vmul.f32 1.442695, %v1109_v47  ;;  %v876_v53 = vsel %vm381_vm6, %v1987_v50, 0.0 }
 0x2f5   :  { %877 = vadd.xlane.f32.xlu1 %v876_v53  ;;  %v1107_v60 = vpop.xlane.xlu0 %1106  ;;  %v894_v6 = vpop.permute.xlu1 %893 }
 0x2f6   :  { %1578 = vpow2.f32 %v1113_v51  ;;  %v1110_v62 = vsub.f32 %v1937_v63, %v1107_v60 }
 0x2f7   :  { %1580 = vpow2.f32 %v872_v61 }
 0x2f8   :  { %v1115_v4 = vmul.f32 1.442695, %v1110_v62 }
 0x2fa   :  { %1582 = vpow2.f32 %v1115_v4 }
 0x2fb   :  { %v1991_v52 = vpop.eup %1574 }
 0x2fc   :  { %v882_v54 = vsel %vm381_vm6, %v1991_v52, 0.0 }
 0x2fd   :  { %883 = vadd.xlane.f32.xlu1 %v882_v54 }
 0x2ff   :  { %v1995_v55 = vpop.eup %1576 }
 0x300   :  { %v1117_v56 = vsel %vm381_vm6, %v1995_v55, 0.0 }
 0x301   :  { %1118 = vadd.xlane.f32.xlu1 %v1117_v56 }
 0x303   :  { %v1999_v57 = vpop.eup %1578 }
 0x304   :  { %v1120_v58 = vsel %vm381_vm6, %v1999_v57, 0.0  ;;  %v2009_v5 = vpop.eup %1580 }
 0x305   :  { %1121 = vadd.xlane.f32.xlu1 %v1120_v58  ;;  %v879_v8 = vsel %vm381_vm6, %v2009_v5, 0.0 }
 0x307   :  { %1136 = vrot.lane.b32.xlu0 %v1805_v39, %s1729_s16  ;;  %v2013_v9 = vpop.eup %1582  ;;  %v896_v39 = vpop.permute.xlu0 %895 }
 0x308   :  { %v1123_v63 = vsel %vm381_vm6, %v2013_v9, 0.0 }
 0x316   :  { %1134 = vrot.lane.b32.xlu1 %v1811_v41, %s1729_s16 }
 0x326   :  { %v402_v40 = vpop.xlane.xlu1 %401  ;;  %880 = vadd.xlane.f32.xlu0 %v879_v8 }
 0x327   :  { %1584 = vrcp.f32 %v402_v40 }
 0x32a   :  { %1124 = vadd.xlane.f32.xlu0 %v1123_v63  ;;  %v405_v10 = vpop.xlane.xlu0 %404 }
 0x32b   :  { %1586 = vrcp.f32 %v405_v10 }
 0x334   :  { %v1585_v41 = vpop.eup %1584 }
 0x335   :  { %v412_v13 = vmul.f32 %v1585_v41, %v1953_v12 }
 0x337   :  { %1433 = vmatmul.mubr.msk.f32.vlgmr.msra.gmra.mxu1 %vm381_vm6, %v412_v13 }
 0x338   :  { %v1587_v16 = vpop.eup %1586  ;;  %1457 = vmatpush3.msra.mxu1 %v1945_v2  ;;  %1435 = vmatprep.mubr.msk.f32.mxu1 %vm1726_vm1, %v1725_v11  ;;  %v892_v2 = vpop.permute.xlu1 %891 }
 0x339   :  { %1458 = vmatprep.subr.mxu1 %v1725_v11  ;;  %v413_v1 = vmul.f32 %v1587_v16, %v1957_v15 }
 0x33a   :  { %1459 = vmatpush3.msra.mxu1 %v1947_v3 }
 0x33b   :  { %1460 = vmatprep.subr.mxu1 %v1725_v11  ;;  %1436 = vmatmul.mubr.msk.f32.gmra.mxu1 %vm381_vm6, %v413_v1 }
 0x33c   :  { %1461 = vmatpush3.msra.mxu1 %v1941_v0  ;;  %1438 = vmatprep.mubr.msk.f32.mxu1 %vm1726_vm1, %v1725_v11 }
 0x33d   :  { %1486 = vmatprep.subr.mxu1 %v1725_v11 }
 0x340   :  { %1132 = vrot.lane.b32.xlu0 %v1819_v42, %s1729_s16 }
 0x35b   :  { %v408_v12 = vpop.xlane.xlu1 %407 }
 0x35c   :  { %1588 = vrcp.f32 %v408_v12 }
 0x369   :  { %v1589_v15 = vpop.eup %1588 }
 0x36a   :  { %v414_v3 = vmul.f32 %v1589_v15, %v1964_v18 }
 0x36c   :  { %1439 = vmatmul.mubr.msk.f32.gmra.mxu1 %vm381_vm6, %v414_v3 }
 0x36d   :  { %1462 = vmatprep.mubr.msk.f32.mxu1 %vm1726_vm1, %v1725_v11 }
 0x372   :  { %v634_v0 = vpop.xlane.xlu0 %633 }
 0x373   :  { %1590 = vrcp.f32 %v634_v0 }
 0x376   :  { %v637_v7 = vpop.xlane.xlu1 %636 }
 0x377   :  { %1592 = vrcp.f32 %v637_v7 }
 0x37a   :  { %v640_v17 = vpop.xlane.xlu0 %639 }
 0x37b   :  { %1594 = vrcp.f32 %v640_v17 }
 0x37e   :  { %v878_v20 = vpop.xlane.xlu1 %877  ;;  %v1137_v31 = vpop.permute.xlu0 %1136 }
 0x37f   :  { %1596 = vrcp.f32 %v878_v20 }
 0x380   :  { %v1591_v42 = vpop.eup %1590 }
 0x381   :  { %v644_v21 = vmul.f32 %v1591_v42, %v1972_v35 }
 0x383   :  { %1463 = vmatmul.mubr.msk.f32.vlgmr.msra.gmra.mxu1 %vm381_vm6, %v644_v21 }
 0x384   :  { %v1593_v22 = vpop.eup %1592  ;;  %1487 = vmatpush3.msra.mxu1 %v896_v39  ;;  %1465 = vmatprep.mubr.msk.f32.mxu1 %vm1726_vm1, %v1725_v11 }
 0x385   :  { %1488 = vmatprep.subr.mxu1 %v1725_v11  ;;  %v645_v18 = vmul.f32 %v1593_v22, %v1977_v38 }
 0x386   :  { %1489 = vmatpush3.msra.mxu1 %v894_v6  ;;  %v884_v23 = vpop.xlane.xlu1 %883 }
 0x387   :  { %1490 = vmatprep.subr.mxu1 %v1725_v11  ;;  %1466 = vmatmul.mubr.msk.f32.gmra.mxu1 %vm381_vm6, %v645_v18 }
 0x388   :  { %v1595_v25 = vpop.eup %1594  ;;  %1491 = vmatpush3.msra.mxu1 %v892_v2  ;;  %1468 = vmatprep.mubr.msk.f32.mxu1 %vm1726_vm1, %v1725_v11 }
 0x389   :  { %v646_v26 = vmul.f32 %v1595_v25, %v1982_v45  ;;  %1516 = vmatprep.subr.mxu1 %v1725_v11 }
 0x38a   :  { %v1119_v27 = vpop.xlane.xlu1 %1118 }
 0x38b   :  { %1469 = vmatmul.mubr.msk.f32.gmra.mxu1 %vm381_vm6, %v646_v26 }
 0x38c   :  { %v1597_v28 = vpop.eup %1596  ;;  %1492 = vmatprep.mubr.msk.f32.mxu1 %vm1726_vm1, %v1725_v11 }
 0x38d   :  { %v888_v14 = vmul.f32 %v1597_v28, %v1987_v50 }
 0x38e   :  { %v1122_v30 = vpop.xlane.xlu1 %1121 }
 0x38f   :  { %1493 = vmatmul.mubr.msk.f32.vlgmr.msra.gmra.mxu1 %vm381_vm6, %v888_v14 }
 0x390   :  { %1517 = vmatpush3.msra.mxu1 %v1137_v31  ;;  %1495 = vmatprep.mubr.msk.f32.mxu1 %vm1726_vm1, %v1725_v11 }
 0x391   :  { %1518 = vmatprep.subr.mxu1 %v1725_v11 }
 0x392   :  { %v1135_v32 = vpop.permute.xlu1 %1134 }
 0x393   :  { %1519 = vmatpush3.msra.mxu1 %v1135_v32 }
 0x394   :  { %1520 = vmatprep.subr.mxu1 %v1725_v11 }
 0x3af   :  { %v881_v33 = vpop.xlane.xlu0 %880 }
 0x3b0   :  { %1598 = vrcp.f32 %v881_v33 }
 0x3b1   :  { %1600 = vrcp.f32 %v884_v23 }
 0x3b2   :  { %1602 = vrcp.f32 %v1119_v27 }
 0x3b3   :  { %v1125_v35 = vpop.xlane.xlu0 %1124  ;;  %1604 = vrcp.f32 %v1122_v30 }
 0x3b4   :  { %1606 = vrcp.f32 %v1125_v35 }
 0x3b7   :  { %v1133_v19 = vpop.permute.xlu0 %1132 }
 0x3b8   :  { %1521 = vmatpush3.msra.mxu1 %v1133_v19 }
 0x3bd   :  { %v1599_v36 = vpop.eup %1598 }
 0x3be   :  { %v889_v37 = vmul.f32 %v1599_v36, %v2009_v5  ;;  %v1601_v24 = vpop.eup %1600 }
 0x3bf   :  { %v890_v38 = vmul.f32 %v1601_v24, %v1991_v52  ;;  %v1603_v29 = vpop.eup %1602 }
 0x3c0   :  { %1496 = vmatmul.mubr.msk.f32.gmra.mxu1 %vm381_vm6, %v889_v37  ;;  %v1129_v43 = vmul.f32 %v1603_v29, %v1995_v55  ;;  %v1605_v44 = vpop.eup %1604 }
 0x3c1   :  { %1498 = vmatprep.mubr.msk.f32.mxu1 %vm1726_vm1, %v1725_v11  ;;  %v1130_v34 = vmul.f32 %v1605_v44, %v1999_v57  ;;  %v1607_v45 = vpop.eup %1606 }
 0x3c2   :  { %v1131_v46 = vmul.f32 %v1607_v45, %v2013_v9 }
 0x3c4   :  { %1499 = vmatmul.mubr.msk.f32.gmra.mxu1 %vm381_vm6, %v890_v38 }
 0x3c5   :  { %1522 = vmatprep.mubr.msk.f32.mxu1 %vm1726_vm1, %v1725_v11 }
 0x3c8   :  { %1523 = vmatmul.mubr.msk.f32.vlgmr.msra.gmra.mxu1 %vm381_vm6, %v1129_v43 }
 0x3c9   :  { %1525 = vmatprep.mubr.msk.f32.mxu1 %vm1726_vm1, %v1725_v11 }
 0x3cc   :  { %1526 = vmatmul.mubr.msk.f32.gmra.mxu1 %vm381_vm6, %v1130_v34 }
 0x3cd   :  { %1528 = vmatprep.mubr.msk.f32.mxu1 %vm1726_vm1, %v1725_v11 }
 0x3d0   :  { %1529 = vmatmul.mubr.msk.f32.gmra.mxu1 %vm381_vm6, %v1131_v46 }
 0x3f7   :  { %v490_v48 = vpop.f32.mrf.mxu1 }
 0x3f9   :  { %v1434_v49 = vpop.f32.mrf.mxu1 }
 0x3fb   :  { %v495_v47 = vpop.f32.mrf.mxu1 }
 0x3fd   :  { %v1437_v50 = vpop.f32.mrf.mxu1 }
 0x42c   :  { %v500_v51 = vpop.f32.mrf.mxu1 }
 0x42e   :  { %v1440_v53 = vpop.f32.mrf.mxu1 }
 0x443   :  { %v734_v52 = vpop.f32.mrf.mxu1 }
 0x444   :  { %1233 = vrot.lane.b32.xlu1 %v734_v52, %s1722_s8 }
 0x445   :  { %v1464_v54 = vpop.f32.mrf.mxu1 }
 0x447   :  { %v739_v55 = vpop.f32.mrf.mxu1 }
 0x448   :  { %1235 = vrot.lane.b32.xlu0 %v739_v55, %s1722_s8 }
 0x449   :  { %v1467_v56 = vpop.f32.mrf.mxu1 }
 0x44b   :  { %v744_v57 = vpop.f32.mrf.mxu1 }
 0x44c   :  { %1237 = vrot.lane.b32.xlu1 %v744_v57, %s1722_s8 }
 0x44d   :  { %v1470_v11 = vpop.f32.mrf.mxu1 }
 0x44f   :  { %v975_v58 = vpop.f32.mrf.mxu1 }
 0x450   :  { %1245 = vrot.lane.b32.xlu0 %v975_v58, %s1730_s17 }
 0x451   :  { %v1494_v59 = vpop.f32.mrf.mxu1 }
 0x480   :  { %v980_v60 = vpop.f32.mrf.mxu1 }
 0x481   :  { %1247 = vrot.lane.b32.xlu1 %v980_v60, %s1730_s17 }
 0x482   :  { %v1497_v61 = vpop.f32.mrf.mxu1 }
 0x484   :  { %v985_v62 = vpop.f32.mrf.mxu1 }
 0x485   :  { %1249 = vrot.lane.b32.xlu0 %v985_v62, %s1730_s17 }
 0x486   :  { %v1500_v4 = vpop.f32.mrf.mxu1 }
 0x488   :  { %v1216_v5 = vpop.f32.mrf.mxu1 }
 0x489   :  { %1257 = vrot.lane.b32.xlu1 %v1216_v5, %s1731_s18 }
 0x48a   :  { %v1524_v6 = vpop.f32.mrf.mxu1 }
 0x48c   :  { %v1221_v8 = vpop.f32.mrf.mxu1 }
 0x48d   :  { %1259 = vrot.lane.b32.xlu0 %v1221_v8, %s1731_s18 }
 0x48e   :  { %v1527_v9 = vpop.f32.mrf.mxu1 }
 0x490   :  { %v1226_v39 = vpop.f32.mrf.mxu1 }
 0x491   :  { %1261 = vrot.lane.b32.xlu1 %v1226_v39, %s1731_s18 }
 0x492   :  { %v1530_v40 = vpop.f32.mrf.mxu1 }
 0x4b6   :  { %v1234_v63 = vpop.permute.xlu1 %1233 }
 0x4b7   :  { %v1266_v1 = vsel %vm276_vm2, %v490_v48, %v1234_v63 }
 0x4ba   :  { %v1236_v10 = vpop.permute.xlu0 %1235 }
 0x4bb   :  { %v1267_v7 = vsel %vm276_vm2, %v495_v47, %v1236_v10 }
 0x4be   :  { %v1238_v41 = vpop.permute.xlu1 %1237 }
 0x4bf   :  { %v1268_v22 = vsel %vm276_vm2, %v500_v51, %v1238_v41 }
 0x4c2   :  { %v1246_v13 = vpop.permute.xlu0 %1245 }
 0x4c3   :  { %v1270_v2 = vsel %vm1269_vm7, %v1266_v1, %v1246_v13 }
 0x4f3   :  { %v1248_v16 = vpop.permute.xlu1 %1247 }
 0x4f4   :  { %v1271_v17 = vsel %vm1269_vm7, %v1267_v7, %v1248_v16 }
 0x4f7   :  { %v1250_v12 = vpop.permute.xlu0 %1249 }
 0x4f8   :  { %v1272_v18 = vsel %vm1269_vm7, %v1268_v22, %v1250_v12 }
 0x4fb   :  { %v1258_v15 = vpop.permute.xlu1 %1257 }
 0x4fc   :  { %v1273_v3 = vsel %vm381_vm6, %v1270_v2, %v1258_v15 }
 0x4fd   :  { %v1276_v0 = vsel %vm108_vm0, %v1273_v3, 0.0 }
 0x4fe   :  { %1279 = vst [vmem:[#allocation10] sm:$0xff] %v1276_v0 }
 0x4ff   :  { %v1260_v20 = vpop.permute.xlu0 %1259 }
 0x500   :  { %v1274_v42 = vsel %vm381_vm6, %v1271_v17, %v1260_v20 }
 0x501   :  { %v1277_v21 = vsel %vm108_vm0, %v1274_v42, 0.0 }
 0x502   :  { %1280 = vst [vmem:[#allocation10 + $0x8] sm:$0xff] %v1277_v21 }
 0x503   :  { %v1262_v23 = vpop.permute.xlu1 %1261 }
 0x504   :  { %v1275_v25 = vsel %vm381_vm6, %v1272_v18, %v1262_v23 }
 0x505   :  { %v1278_v26 = vsel %vm108_vm0, %v1275_v25, 0.0 }
 0x506   :  { %1281 = vst [vmem:[#allocation10 + $0x10] sm:$0xff] %v1278_v26 }
 0x507   :  { %1699 = shalt.err (!%p1696_p10)
}
 0x508   :  { %1293 = dma.vmem_to_hbm [thread:$0]  %s1288_s20, 384, %s2102_s5, [#allocation4], %s1721_s1, %s1721_s1, %s1722_s8  }
 0x509   :  { %1714 = dma.done.wait [#allocation4], 384  }
 0x50a   :  { %1715 = vsyncadd [#allocation4], 4294966912 }
 0x50b   :  { %1297 = vsyncpa [#allocation3], 1 }
 0x50c   :  { %1298 = vsyncpa [#allocation6], 1 }
 0x50d   :  { %1299 = vsyncpa [#allocation9], 1 }
 0x50e   :  { %1300 = vsyncpa [#allocation4], 1 }

</bundles_post_ra>
